<compile_context>
chip_gen: v6e
topology: v6e:2x2x1
jax: 0.10.0
libtpu: 0.0.40
codegen_flags: <defaults>
</compile_context>

<pallas_src>
import jax
import jax.numpy as jnp
from jax.experimental import pallas as pl
from jax.experimental.pallas import tpu as pltpu


# ---------------------------------------------------------------------------
# Pallas kernel: identity "embedding lookup" as raw HBM->HBM DMA, one layer
# of each of the three tables per grid step.  No VMEM round trip, no VPU work.
# ---------------------------------------------------------------------------
def _bias_copy_kernel(enc_in, self_in, cross_in,
                      enc_out, self_out, cross_out, sems):
    l = pl.program_id(0)
    copies = (
        pltpu.make_async_copy(enc_in.at[l], enc_out.at[l], sems.at[0]),
        pltpu.make_async_copy(self_in.at[l], self_out.at[l], sems.at[1]),
        pltpu.make_async_copy(cross_in.at[l], cross_out.at[l], sems.at[2]),
    )
    # Issue all three layer copies so they overlap each other, then wait.
    for cp in copies:
        cp.start()
    for cp in copies:
        cp.wait()


def bias_lookup(enc_tbl, self_tbl, cross_tbl):
    """enc_tbl: (L, Vs, D), self_tbl/cross_tbl: (L, Vt, D).

    Returns (enc, dec_self, dec_cross) with the same shapes — the result of
    an nn.Embedding lookup with positions = arange(V) on every layer's table,
    materialized as new arrays (matching PyTorch, where the gather allocates
    a fresh tensor rather than aliasing the weights).
    """
    L, Vs, D = enc_tbl.shape
    Lt, Vt, Dt = self_tbl.shape
    assert (L, D) == (Lt, Dt) and cross_tbl.shape == self_tbl.shape

    any_spec = pl.BlockSpec(memory_space=pl.ANY)   # raw HBM refs, no auto-DMA

    return pl.pallas_call(
        _bias_copy_kernel,
        out_shape=(
            jax.ShapeDtypeStruct((L, Vs, D), enc_tbl.dtype),
            jax.ShapeDtypeStruct((L, Vt, D), self_tbl.dtype),
            jax.ShapeDtypeStruct((L, Vt, D), cross_tbl.dtype),
        ),
        grid_spec=pltpu.PrefetchScalarGridSpec(
            num_scalar_prefetch=0,
            grid=(L,),
            in_specs=[any_spec, any_spec, any_spec],
            out_specs=(any_spec, any_spec, any_spec),
            scratch_shapes=[pltpu.SemaphoreType.DMA((3,))],
        ),
        compiler_params=pltpu.CompilerParams(
            # Layer axis parallel: shards the per-layer DMAs across the two
            # TensorCores on v7x; neutral on single-core v5e/v6e.
            dimension_semantics=("parallel",)),
    )(enc_tbl, self_tbl, cross_tbl)


# ---------------------------------------------------------------------------
# Bias module (parameters + forward), mirroring the PyTorch class
# ---------------------------------------------------------------------------
class Bias:
    def __init__(self, args, config):
        self.args = args
        self.match_n_layer = config["num_hidden_layers"]
        self.n_embd = config["d_model"]
        src_len = args["max_source_length"] + 2
        tgt_len = args["max_target_length"] + 2
        L, D = self.match_n_layer, self.n_embd
        # nn.init.constant_(embed.weight, 0.0) -> deterministic zero init.
        # Tables stored stacked (L, V, D) with d_model on the contiguous axis.
        self.encoder_attn_bias = jnp.zeros((L, src_len, D), jnp.float32)
        self.decoder_self_attn_bias = jnp.zeros((L, tgt_len, D), jnp.float32)
        self.decoder_cross_attn_bias = jnp.zeros((L, tgt_len, D), jnp.float32)

    def _compute(self, bsz, nsamples=1):
        """The actual computation of forward(): per-layer embedding lookups.

        positions = arange(max_len) and each table has exactly max_len rows,
        so the lookup is an identity copy done by one fused Pallas kernel.
        Returns the stacked (L, V, D) results (no per-layer re-slicing here —
        consumers should index per layer inside their own jit so the slices
        fuse instead of re-copying through HBM).
        """
        del bsz, nsamples  # unused by the original forward's computation
        return bias_lookup(
            self.encoder_attn_bias,
            self.decoder_self_attn_bias,
            self.decoder_cross_attn_bias,
        )

    def layer_dicts(self, stacked):
        """Optional convenience: per-layer dicts like the PyTorch `result`.

        Only intended for host-side inspection/tests; in a jitted consumer,
        index the stacked arrays directly instead.
        """
        enc, dec_self, dec_cross = stacked
        return [
            {
                "encoder": enc[ii],              # (max_src_len, d_model)
                "self": dec_self[ii],            # (max_tgt_len, d_model)
                "encoder_decoder": dec_cross[ii] # (max_tgt_len, d_model)
            }
            for ii in range(self.match_n_layer)
        ]

    def forward(self, bsz, nsamples=1, device=None):
        # Faithful to the PyTorch module: performs the lookups, returns None.
        _ = self._compute(bsz, nsamples)
        return


if __name__ == "__main__":
    # Small, module-consistent configuration (d_model = 128 lane-dense).
    args = {"max_source_length": 8, "max_target_length": 6}   # -> Vs=10, Vt=8
    config = {"num_hidden_layers": 2, "d_model": 128}
    L = config["num_hidden_layers"]
    Vs = args["max_source_length"] + 2
    Vt = args["max_target_length"] + 2
    D = config["d_model"]

    module = Bias(args, config)

    # Replace the (all-zero) parameters with deterministic random tables so
    # the kernel's work is observable and cannot be elided as dead code.
    key = jax.random.PRNGKey(0)
    k_enc, k_self, k_cross = jax.random.split(key, 3)
    module.encoder_attn_bias = jax.random.normal(k_enc, (L, Vs, D), jnp.float32)
    module.decoder_self_attn_bias = jax.random.normal(k_self, (L, Vt, D), jnp.float32)
    module.decoder_cross_attn_bias = jax.random.normal(k_cross, (L, Vt, D), jnp.float32)

    # Run the real computation and block on it.
    stacked = module._compute(bsz=2, nsamples=1)
    jax.block_until_ready(stacked)

    enc, dec_self, dec_cross = stacked
    assert enc.shape == (L, Vs, D)
    assert dec_self.shape == (L, Vt, D)
    assert dec_cross.shape == (L, Vt, D)

    # Semantics check: positions = arange(V) -> lookup == the full table rows.
    assert jnp.allclose(enc, module.encoder_attn_bias)
    assert jnp.allclose(dec_self, module.decoder_self_attn_bias)
    assert jnp.allclose(dec_cross, module.decoder_cross_attn_bias)

    # Per-layer dict view (test-only path) matches the PyTorch `result` layout.
    result = module.layer_dicts(stacked)
    for ii, d in enumerate(result):
        assert d["encoder"].shape == (Vs, D)
        assert d["self"].shape == (Vt, D)
        assert d["encoder_decoder"].shape == (Vt, D)
        assert jnp.allclose(d["encoder"], module.encoder_attn_bias[ii])
        assert jnp.allclose(d["self"], module.decoder_self_attn_bias[ii])
        assert jnp.allclose(d["encoder_decoder"],
                            module.decoder_cross_attn_bias[ii])

    # The original forward() returns None; verify that too.
    assert module.forward(bsz=2) is None

    print("KERNEL_OK")
</pallas_src>

<mosaic_0001>
module attributes {stable_mosaic.version = 11 : i64} {
  func.func @_bias_copy_kernel(%arg0: i32, %arg1: memref<2x10x128xf32, #tpu.memory_space<any>>, %arg2: memref<2x8x128xf32, #tpu.memory_space<any>>, %arg3: memref<2x8x128xf32, #tpu.memory_space<any>>, %arg4: memref<2x10x128xf32, #tpu.memory_space<any>>, %arg5: memref<2x8x128xf32, #tpu.memory_space<any>>, %arg6: memref<2x8x128xf32, #tpu.memory_space<any>>, %arg7: memref<3x!tpu.dma_semaphore, #tpu.memory_space<semaphore_mem>>) attributes {dimension_semantics = [#tpu.dimension_semantics<parallel>], iteration_bounds = array<i64: 2>, scalar_prefetch = 0 : i64, scratch_operands = 1 : i64, tpu.core_type = #tpu.core_type<tc>, window_params = [{}, {}, {}, {}, {}, {}]} {
    %c0_i32 = arith.constant 0 : i32
    %c0_i32_0 = arith.constant 0 : i32
    %c0_i32_1 = arith.constant 0 : i32
    %0 = tpu.memref_slice %arg1[%arg0, %c0_i32_0, %c0_i32_1] : memref<2x10x128xf32, #tpu.memory_space<any>> -> memref<1x10x128xf32, #tpu.memory_space<any>>
    %1 = tpu.memref_squeeze %0 : memref<1x10x128xf32, #tpu.memory_space<any>> -> memref<10x128xf32, #tpu.memory_space<any>>
    %c0_i32_2 = arith.constant 0 : i32
    %c0_i32_3 = arith.constant 0 : i32
    %2 = tpu.memref_slice %arg4[%arg0, %c0_i32_2, %c0_i32_3] : memref<2x10x128xf32, #tpu.memory_space<any>> -> memref<1x10x128xf32, #tpu.memory_space<any>>
    %3 = tpu.memref_squeeze %2 : memref<1x10x128xf32, #tpu.memory_space<any>> -> memref<10x128xf32, #tpu.memory_space<any>>
    %4 = tpu.memref_slice %arg7[%c0_i32] : memref<3x!tpu.dma_semaphore, #tpu.memory_space<semaphore_mem>> -> memref<1x!tpu.dma_semaphore, #tpu.memory_space<semaphore_mem>>
    %5 = tpu.memref_squeeze %4 : memref<1x!tpu.dma_semaphore, #tpu.memory_space<semaphore_mem>> -> memref<!tpu.dma_semaphore, #tpu.memory_space<semaphore_mem>>
    tpu.enqueue_dma source(%1 : memref<10x128xf32, #tpu.memory_space<any>>) target(%3 : memref<10x128xf32, #tpu.memory_space<any>>) target_semaphore(%5 : memref<!tpu.dma_semaphore, #tpu.memory_space<semaphore_mem>>)
    %c1_i32 = arith.constant 1 : i32
    %c0_i32_4 = arith.constant 0 : i32
    %c0_i32_5 = arith.constant 0 : i32
    %6 = tpu.memref_slice %arg2[%arg0, %c0_i32_4, %c0_i32_5] : memref<2x8x128xf32, #tpu.memory_space<any>> -> memref<1x8x128xf32, #tpu.memory_space<any>>
    %7 = tpu.memref_squeeze %6 : memref<1x8x128xf32, #tpu.memory_space<any>> -> memref<8x128xf32, #tpu.memory_space<any>>
    %c0_i32_6 = arith.constant 0 : i32
    %c0_i32_7 = arith.constant 0 : i32
    %8 = tpu.memref_slice %arg5[%arg0, %c0_i32_6, %c0_i32_7] : memref<2x8x128xf32, #tpu.memory_space<any>> -> memref<1x8x128xf32, #tpu.memory_space<any>>
    %9 = tpu.memref_squeeze %8 : memref<1x8x128xf32, #tpu.memory_space<any>> -> memref<8x128xf32, #tpu.memory_space<any>>
    %10 = tpu.memref_slice %arg7[%c1_i32] : memref<3x!tpu.dma_semaphore, #tpu.memory_space<semaphore_mem>> -> memref<1x!tpu.dma_semaphore, #tpu.memory_space<semaphore_mem>>
    %11 = tpu.memref_squeeze %10 : memref<1x!tpu.dma_semaphore, #tpu.memory_space<semaphore_mem>> -> memref<!tpu.dma_semaphore, #tpu.memory_space<semaphore_mem>>
    tpu.enqueue_dma source(%7 : memref<8x128xf32, #tpu.memory_space<any>>) target(%9 : memref<8x128xf32, #tpu.memory_space<any>>) target_semaphore(%11 : memref<!tpu.dma_semaphore, #tpu.memory_space<semaphore_mem>>)
    %c2_i32 = arith.constant 2 : i32
    %c0_i32_8 = arith.constant 0 : i32
    %c0_i32_9 = arith.constant 0 : i32
    %12 = tpu.memref_slice %arg3[%arg0, %c0_i32_8, %c0_i32_9] : memref<2x8x128xf32, #tpu.memory_space<any>> -> memref<1x8x128xf32, #tpu.memory_space<any>>
    %13 = tpu.memref_squeeze %12 : memref<1x8x128xf32, #tpu.memory_space<any>> -> memref<8x128xf32, #tpu.memory_space<any>>
    %c0_i32_10 = arith.constant 0 : i32
    %c0_i32_11 = arith.constant 0 : i32
    %14 = tpu.memref_slice %arg6[%arg0, %c0_i32_10, %c0_i32_11] : memref<2x8x128xf32, #tpu.memory_space<any>> -> memref<1x8x128xf32, #tpu.memory_space<any>>
    %15 = tpu.memref_squeeze %14 : memref<1x8x128xf32, #tpu.memory_space<any>> -> memref<8x128xf32, #tpu.memory_space<any>>
    %16 = tpu.memref_slice %arg7[%c2_i32] : memref<3x!tpu.dma_semaphore, #tpu.memory_space<semaphore_mem>> -> memref<1x!tpu.dma_semaphore, #tpu.memory_space<semaphore_mem>>
    %17 = tpu.memref_squeeze %16 : memref<1x!tpu.dma_semaphore, #tpu.memory_space<semaphore_mem>> -> memref<!tpu.dma_semaphore, #tpu.memory_space<semaphore_mem>>
    tpu.enqueue_dma source(%13 : memref<8x128xf32, #tpu.memory_space<any>>) target(%15 : memref<8x128xf32, #tpu.memory_space<any>>) target_semaphore(%17 : memref<!tpu.dma_semaphore, #tpu.memory_space<semaphore_mem>>)
    %c0_i32_12 = arith.constant 0 : i32
    %c0_i32_13 = arith.constant 0 : i32
    %c0_i32_14 = arith.constant 0 : i32
    %18 = tpu.memref_slice %arg1[%arg0, %c0_i32_13, %c0_i32_14] : memref<2x10x128xf32, #tpu.memory_space<any>> -> memref<1x10x128xf32, #tpu.memory_space<any>>
    %19 = tpu.memref_squeeze %18 : memref<1x10x128xf32, #tpu.memory_space<any>> -> memref<10x128xf32, #tpu.memory_space<any>>
    %c0_i32_15 = arith.constant 0 : i32
    %c0_i32_16 = arith.constant 0 : i32
    %20 = tpu.memref_slice %arg4[%arg0, %c0_i32_15, %c0_i32_16] : memref<2x10x128xf32, #tpu.memory_space<any>> -> memref<1x10x128xf32, #tpu.memory_space<any>>
    %21 = tpu.memref_squeeze %20 : memref<1x10x128xf32, #tpu.memory_space<any>> -> memref<10x128xf32, #tpu.memory_space<any>>
    %22 = tpu.memref_slice %arg7[%c0_i32_12] : memref<3x!tpu.dma_semaphore, #tpu.memory_space<semaphore_mem>> -> memref<1x!tpu.dma_semaphore, #tpu.memory_space<semaphore_mem>>
    %23 = tpu.memref_squeeze %22 : memref<1x!tpu.dma_semaphore, #tpu.memory_space<semaphore_mem>> -> memref<!tpu.dma_semaphore, #tpu.memory_space<semaphore_mem>>
    tpu.wait_dma2 semaphore(%23 : memref<!tpu.dma_semaphore, #tpu.memory_space<semaphore_mem>>) src(%19 : memref<10x128xf32, #tpu.memory_space<any>>) dst(%21 : memref<10x128xf32, #tpu.memory_space<any>>)
    %c1_i32_17 = arith.constant 1 : i32
    %c0_i32_18 = arith.constant 0 : i32
    %c0_i32_19 = arith.constant 0 : i32
    %24 = tpu.memref_slice %arg2[%arg0, %c0_i32_18, %c0_i32_19] : memref<2x8x128xf32, #tpu.memory_space<any>> -> memref<1x8x128xf32, #tpu.memory_space<any>>
    %25 = tpu.memref_squeeze %24 : memref<1x8x128xf32, #tpu.memory_space<any>> -> memref<8x128xf32, #tpu.memory_space<any>>
    %c0_i32_20 = arith.constant 0 : i32
    %c0_i32_21 = arith.constant 0 : i32
    %26 = tpu.memref_slice %arg5[%arg0, %c0_i32_20, %c0_i32_21] : memref<2x8x128xf32, #tpu.memory_space<any>> -> memref<1x8x128xf32, #tpu.memory_space<any>>
    %27 = tpu.memref_squeeze %26 : memref<1x8x128xf32, #tpu.memory_space<any>> -> memref<8x128xf32, #tpu.memory_space<any>>
    %28 = tpu.memref_slice %arg7[%c1_i32_17] : memref<3x!tpu.dma_semaphore, #tpu.memory_space<semaphore_mem>> -> memref<1x!tpu.dma_semaphore, #tpu.memory_space<semaphore_mem>>
    %29 = tpu.memref_squeeze %28 : memref<1x!tpu.dma_semaphore, #tpu.memory_space<semaphore_mem>> -> memref<!tpu.dma_semaphore, #tpu.memory_space<semaphore_mem>>
    tpu.wait_dma2 semaphore(%29 : memref<!tpu.dma_semaphore, #tpu.memory_space<semaphore_mem>>) src(%25 : memref<8x128xf32, #tpu.memory_space<any>>) dst(%27 : memref<8x128xf32, #tpu.memory_space<any>>)
    %c2_i32_22 = arith.constant 2 : i32
    %c0_i32_23 = arith.constant 0 : i32
    %c0_i32_24 = arith.constant 0 : i32
    %30 = tpu.memref_slice %arg3[%arg0, %c0_i32_23, %c0_i32_24] : memref<2x8x128xf32, #tpu.memory_space<any>> -> memref<1x8x128xf32, #tpu.memory_space<any>>
    %31 = tpu.memref_squeeze %30 : memref<1x8x128xf32, #tpu.memory_space<any>> -> memref<8x128xf32, #tpu.memory_space<any>>
    %c0_i32_25 = arith.constant 0 : i32
    %c0_i32_26 = arith.constant 0 : i32
    %32 = tpu.memref_slice %arg6[%arg0, %c0_i32_25, %c0_i32_26] : memref<2x8x128xf32, #tpu.memory_space<any>> -> memref<1x8x128xf32, #tpu.memory_space<any>>
    %33 = tpu.memref_squeeze %32 : memref<1x8x128xf32, #tpu.memory_space<any>> -> memref<8x128xf32, #tpu.memory_space<any>>
    %34 = tpu.memref_slice %arg7[%c2_i32_22] : memref<3x!tpu.dma_semaphore, #tpu.memory_space<semaphore_mem>> -> memref<1x!tpu.dma_semaphore, #tpu.memory_space<semaphore_mem>>
    %35 = tpu.memref_squeeze %34 : memref<1x!tpu.dma_semaphore, #tpu.memory_space<semaphore_mem>> -> memref<!tpu.dma_semaphore, #tpu.memory_space<semaphore_mem>>
    tpu.wait_dma2 semaphore(%35 : memref<!tpu.dma_semaphore, #tpu.memory_space<semaphore_mem>>) src(%31 : memref<8x128xf32, #tpu.memory_space<any>>) dst(%33 : memref<8x128xf32, #tpu.memory_space<any>>)
    return
  }
}

</mosaic_0001>

<bundles_post_ra>
// kernel: tpu_custom_call.1
= control target key start
LH: loop header
LB: loop body
LE: loop exit
PB: predicated region body
PF: predicated region fallthrough
CT: control target
= control target key end

     0   :  { %s274_s18 = smov 0   ;;  %s327_s0 = inlined_call_operand.vmem [shape: f32[2,10,128], index: 0, kind: input, shape index: {}]   ;;  %s328_s1 = inlined_call_operand.vmem [shape: f32[2,8,128], index: 1, kind: input, shape index: {}]   ;;  %s329_s2 = inlined_call_operand.vmem [shape: f32[2,8,128], index: 2, kind: input, shape index: {}]   ;;  %s330_s3 = inlined_call_operand.vmem [shape: f32[2,10,128], index: 3, kind: output, shape index: {0}]   ;;  %s331_s4 = inlined_call_operand.hbm [shape: f32[2,8,128], index: 4, kind: output, shape index: {1}]   ;;  %s332_s5 = inlined_call_operand.hbm [shape: f32[2,8,128], index: 5, kind: output, shape index: {2}]  }
   0x1 LB: > { %s167_s19 = sshll.u32 %s242_s18, 4  ;;  %s242_s18 = sphi %s274_s18, %s16_s18  }
   0x2   : > { %s19_s22 = scalar_lea.vmem %s327_s0, %s167_s19  ;;  %s20_s25 = scalar_lea.vmem %s330_s3, %s167_s19 }
   0x3   : > { %v59_v0 = vld [vmem:[%s19_s22] sm:$0xff]  ;;  %v168_v1 = vld [vmem:[%s19_s22 + $0x8] sm:$0x3] }
   0x4   : > { %60 = vst [vmem:[%s20_s25] sm:$0xff] %v59_v0  ;;  %169 = vst [vmem:[%s20_s25 + $0x8] sm:$0x3] %v168_v1 }
   0x5   : > { %76 = vsyncadd [#allocation2], 160  ;;  %s170_s26 = sshll.u32 %s242_s18, 3  ;;  %s176_s27 = sshll.u32 %s242_s18, 7 }
   0x6   : > { %s78_s30 = scalar_lea.vmem %s328_s1, %s170_s26  ;;  %s80_s8 = scalar_lea.hbm %s331_s4, %s176_s27 }
   0x7   : > { %s89_s9 = sshll.u32 %s78_s30, 4  ;;  %s93_s12 = scalar_lea.vmem %s329_s2, %s170_s26  ;;  %s90_s9 = int_to_ptr.vmem [resolvable:$true] %s89_s9 }
   0x8   : > { %s300_s15 = scalar_lea.hbm %s332_s5, %s176_s27  ;;  %s186_s16 = scalar_lea.vmem %s90_s9, 128 }
   0x9   : > { %p187_p0 = scmp.ne.s32.totalorder %s90_s9, %s186_s16  ;;  %s188_s20 = sshll.u32 %s328_s1, 4  ;;  %s189_s20 = int_to_ptr.vmem [resolvable:$false] %s188_s20 }
   0xa   : > { %s190_s21 = scalar_lea.vmem %s189_s20, 256  ;;  %p191_p1 = scmp.lt.s32.totalorder %s90_s9, %s189_s20 }
   0xb   : > { %p192_p2 = scmp.lt.s32.totalorder %s190_s21, %s186_s16 }
   0xd   : > { %p193_p3 = por %p192_p2, %p191_p1 }
   0xf   : > { %p194_p4 = pnand %p193_p3, %p187_p0 }
  0x11   : > { %197 = shalt.err (!%p194_p4)  }
  0x12   : > { %s198_s22 = scalar_lea.hbm %s80_s8, 128  ;;  %s200_s25 = scalar_lea.hbm %s331_s4, 256 }
  0x13   : > { %p199_p5 = scmp.ne.s32.totalorder %s80_s8, %s198_s22  ;;  %p201_p6 = scmp.lt.s32.totalorder %s80_s8, %s331_s4 }
  0x14   : > { %p202_p7 = scmp.lt.s32.totalorder %s200_s25, %s198_s22 }
  0x16   : > { %p203_p8 = por %p202_p7, %p201_p6 }
  0x18   : > { %p204_p9 = pnand %p203_p8, %p199_p5 }
  0x1a   : > { %207 = shalt.err (!%p204_p9)  }
  0x1b   : > { %92 = dma.vmem_to_hbm [thread:$0]  %s90_s9, 128, %s80_s8, [#allocation2 + $0x1] }
  0x1c   : > { %s104_s28 = sshll.u32 %s93_s12, 4  ;;  %s210_s7 = sshll.u32 %s329_s2, 4  ;;  %s105_s28 = int_to_ptr.vmem [resolvable:$true] %s104_s28  ;;  %s211_s7 = int_to_ptr.vmem [resolvable:$false] %s210_s7 }
  0x1d   : > { %s208_s29 = scalar_lea.vmem %s105_s28, 128  ;;  %s212_s10 = scalar_lea.vmem %s211_s7, 256 }
  0x1e   : > { %p209_p10 = scmp.ne.s32.totalorder %s105_s28, %s208_s29  ;;  %p213_p11 = scmp.lt.s32.totalorder %s105_s28, %s211_s7 }
  0x1f   : > { %p214_p12 = scmp.lt.s32.totalorder %s212_s10, %s208_s29 }
  0x21   : > { %p215_p13 = por %p214_p12, %p213_p11 }
  0x23   : > { %p216_p0 = pnand %p215_p13, %p209_p10 }
  0x25   : > { %219 = shalt.err (!%p216_p0)  }
  0x26   : > { %s220_s11 = scalar_lea.hbm %s300_s15, 128  ;;  %s222_s12 = scalar_lea.hbm %s332_s5, 256 }
  0x27   : > { %p221_p1 = scmp.ne.s32.totalorder %s300_s15, %s220_s11  ;;  %p223_p2 = scmp.lt.s32.totalorder %s300_s15, %s332_s5 }
  0x28   : > { %p224_p3 = scmp.lt.s32.totalorder %s222_s12, %s220_s11 }
  0x2a   : > { %p225_p4 = por %p224_p3, %p223_p2 }
  0x2c   : > { %p226_p5 = pnand %p225_p4, %p221_p1 }
  0x2e   : > { %229 = shalt.err (!%p226_p5)  }
  0x2f   : > { %107 = dma.vmem_to_hbm [thread:$0]  %s105_s28, 128, %s300_s15, [#allocation2 + $0x2] }
  0x30   : > { %234 = dma.done.wait [#allocation2], 160 }
  0x31   : > { %235 = vsyncadd [#allocation2], 4294967136 }
  0x32   : > { %236 = dma.done.wait [#allocation2 + $0x1], 128 }
  0x33   : > { %237 = vsyncadd [#allocation2 + $0x1], 4294967168 }
  0x34   : > { %238 = dma.done.wait [#allocation2 + $0x2], 128 }
  0x35   : > { %239 = vsyncadd [#allocation2 + $0x2], 4294967168  ;;  %s16_s18 = sadd.s32 1, %s242_s18  }
  0x36   : > { %p13_p6 = scmp.ge.s32.totalorder %s16_s18, 2  }
  0x38   :  { %15 = sbr.rel (!%p13_p6) target bundleno = 1 (0x1), region = 88 }
  0x3d   :  { %116 = vsyncmov [#allocation2] }
  0x40   :  { %s117_s16 = vpop.sfrf %116 }
  0x41   :  { %p173_p7 = scmp.ne.s32.totalorder %s117_s16, 0 }
  0x43   :  { %121 = shalt.err (%p173_p7)  }
  0x44   :  { %123 = vsyncmov [#allocation2 + $0x1] }
  0x47   :  { %s124_s17 = vpop.sfrf %123 }
  0x48   :  { %p174_p8 = scmp.ne.s32.totalorder %s124_s17, 0 }
  0x4a   :  { %128 = shalt.err (%p174_p8)  }
  0x4b   :  { %130 = vsyncmov [#allocation2 + $0x2] }
  0x4e   :  { %s131_s15 = vpop.sfrf %130 }
  0x4f   :  { %p175_p9 = scmp.ne.s32.totalorder %s131_s15, 0 }
  0x51   :  { %135 = shalt.err (%p175_p9)  }

</bundles_post_ra>
